<compile_context>
chip_gen: v7x
topology: tpu7x:2x2x1
jax: 0.10.0
libtpu: 0.0.40
codegen_flags: <defaults>
</compile_context>

<pallas_src>
import functools
import math

import jax
import jax.numpy as jnp
from jax.experimental import pallas as pl
from jax.experimental.pallas import tpu as pltpu

INV_SQRT2 = 1.0 / math.sqrt(2.0)


def _rup(x, m):
    return ((x + m - 1) // m) * m


def _pick_tile(padded, candidates):
    for c in candidates:
        if padded % c == 0:
            return c
    return padded


def _prefer_wide_n():
    """True on chips with a 256-wide MXU (v6e / v7x) -> prefer 256-lane N tiles."""
    try:
        kind = jax.devices()[0].device_kind.lower()
        return not any(tag in kind for tag in ("v2", "v3", "v4", "v5"))
    except Exception:  # pragma: no cover - be conservative if detection fails
        return False


# ----------------------------------------------------------------------------
# GEMM kernel factory.
#   o = epilogue(A @ B), epilogue = +bias [-> LeakyReLU] [+ xs @ Wp + bp] [* scale]
# Ref order: a, b, bias, [xs, pw, pb], o, [acc_scratch (multi-K only)].
# ----------------------------------------------------------------------------
def _make_gemm_kernel(*, neg_slope, out_scale, has_proj, multi_k):
    def kernel(*refs):
        if has_proj:
            a_ref, b_ref, bias_ref, xs_ref, pw_ref, pb_ref, o_ref = refs[:7]
            rest = refs[7:]
        else:
            a_ref, b_ref, bias_ref, o_ref = refs[:4]
            rest = refs[4:]

        def epilogue(acc):
            y = acc + bias_ref[...]
            if neg_slope is not None:
                y = jnp.where(y >= 0.0, y, y * neg_slope)
            if has_proj:
                # 1x1 stride-2 projection residual, fused (K = Cin, tiny).
                res = jnp.dot(xs_ref[...], pw_ref[...],
                              preferred_element_type=jnp.float32) + pb_ref[...]
                y = y + res
            if out_scale != 1.0:
                y = y * out_scale
            o_ref[...] = y.astype(o_ref.dtype)

        if multi_k:
            acc_ref = rest[0]

            @pl.when(pl.program_id(2) == 0)
            def _init():
                acc_ref[...] = jnp.zeros_like(acc_ref)

            acc_ref[...] += jnp.dot(a_ref[...], b_ref[...],
                                    preferred_element_type=jnp.float32)

            @pl.when(pl.program_id(2) == pl.num_programs(2) - 1)
            def _fin():
                epilogue(acc_ref[...])
        else:
            # Single K block: no scratch, no zero-init, write output directly.
            epilogue(jnp.dot(a_ref[...], b_ref[...],
                             preferred_element_type=jnp.float32))

    return kernel


# ----------------------------------------------------------------------------
# JAX glue: AddCoords + NHWC im2col (bf16, emitted pre-padded to (Mp, Kp))
# ----------------------------------------------------------------------------
def _add_coords_nhwc(x):
    """AddCoords (with_r=False): first added channel varies along H, second along W
    (matches the PyTorch AddCoords layout).  Mirrors PyTorch's /(dim-1) exactly."""
    B, H, W, _ = x.shape
    ii = (jnp.arange(H, dtype=jnp.float32) / (H - 1)) * 2.0 - 1.0
    jj = (jnp.arange(W, dtype=jnp.float32) / (W - 1)) * 2.0 - 1.0
    xx = jnp.broadcast_to(ii[None, :, None, None], (B, H, W, 1)).astype(x.dtype)
    yy = jnp.broadcast_to(jj[None, None, :, None], (B, H, W, 1)).astype(x.dtype)
    return jnp.concatenate([x, xx, yy], axis=-1)


def _im2col_nhwc_padded(x, kh, kw, stride, padding, *, Kp, Mp):
    """NHWC im2col -> (Mp, Kp) bf16; K order = (ki, kj) row-major, then channel.
    K zero-padding is appended inside the concatenate (single-pass emission)."""
    B, H, W, C = x.shape
    oh = (H + 2 * padding - kh) // stride + 1
    ow = (W + 2 * padding - kw) // stride + 1
    xp = jnp.pad(x, ((0, 0), (padding, padding), (padding, padding), (0, 0)))
    cols = []
    for ki in range(kh):
        for kj in range(kw):
            cols.append(xp[:, ki:ki + stride * (oh - 1) + 1:stride,
                              kj:kj + stride * (ow - 1) + 1:stride, :])
    K = kh * kw * C
    if Kp > K:
        cols.append(jnp.zeros((B, oh, ow, Kp - K), x.dtype))
    patches = jnp.concatenate(cols, axis=-1).reshape(B * oh * ow, Kp)
    M = B * oh * ow
    if Mp > M:
        patches = jnp.pad(patches, ((0, Mp - M), (0, 0)))
    return patches


# ----------------------------------------------------------------------------
# Conv-as-GEMM wrapper (one pallas_call per conv; proj optionally fused)
# ----------------------------------------------------------------------------
def conv2d_gemm(x_nhwc, pack, *, kernel_size, stride, padding, neg_slope=None,
                proj=None, out_scale=1.0, out_dtype=jnp.float32):
    """y = act(conv(x) + b) [+ proj(xs)] [* out_scale], returned as (B, oh, ow, cout).

    pack: {"w": bf16 (Kp, Np), "b": f32 (1, Np), "n": cout, "k": K}
    proj: optional (xs_rows (M, Cin) f32/bf16, proj_pack) fused into the epilogue.
    """
    B, H, W, C = x_nhwc.shape
    kh = kw = kernel_size
    K = kh * kw * C
    Kp, Np = pack["w"].shape
    assert pack["k"] == K, (pack["k"], K)
    cout = pack["n"]
    oh = (H + 2 * padding - kh) // stride + 1
    ow = (W + 2 * padding - kw) // stride + 1
    M = B * oh * ow

    # ---- tile selection -----------------------------------------------------
    tn = Np if Np <= 256 else _pick_tile(Np, (256, 128))
    tk = Kp if Kp <= 512 else _pick_tile(Kp, (512, 256, 128))
    tm_cap = 1024 if Np <= 128 else 512
    # Keep >= 2 M blocks when there is a single N block (both v7x TCs get work).
    want_m_blocks = 2 if (Np // tn) == 1 and M > 16 else 1
    tm = min(_rup(-(-M // want_m_blocks), 16), tm_cap)
    Mp = _rup(M, tm)
    kt = Kp // tk
    multi_k = kt > 1

    # ---- operands (bf16, padded once, lane-dense) -----------------------------
    a_p = _im2col_nhwc_padded(x_nhwc.astype(jnp.bfloat16), kh, kw, stride, padding,
                              Kp=Kp, Mp=Mp)
    args = [a_p, pack["w"], pack["b"]]

    has_proj = proj is not None
    Cp = 0
    if has_proj:
        xs, ppack = proj
        Cp, Np2 = ppack["w"].shape
        assert Np2 == Np and xs.shape[0] == M, (ppack["w"].shape, Np, xs.shape, M)
        xs_p = jnp.zeros((Mp, Cp), jnp.bfloat16).at[:M, :xs.shape[1]].set(
            xs.astype(jnp.bfloat16))
        args += [xs_p, ppack["w"], ppack["b"]]

    # ---- grid / specs ---------------------------------------------------------
    if multi_k:
        im_a = lambda i, j, k: (i, k)
        im_b = lambda i, j, k: (k, j)
        im_n = lambda i, j, k: (0, j)      # bias / proj weight / proj bias
        im_m = lambda i, j, k: (i, 0)      # proj xs (resident across k)
        im_o = lambda i, j, k: (i, j)
        grid = (Mp // tm, Np // tn, kt)
        dim_sem = ("parallel", "parallel", "arbitrary")
        scratch = [pltpu.VMEM((tm, tn), jnp.float32)]
    else:
        im_a = lambda i, j: (i, 0)
        im_b = lambda i, j: (0, j)
        im_n = im_b
        im_m = im_a
        im_o = lambda i, j: (i, j)
        grid = (Mp // tm, Np // tn)
        dim_sem = ("parallel", "parallel")
        scratch = []

    in_specs = [pl.BlockSpec((tm, tk), im_a),
                pl.BlockSpec((tk, tn), im_b),
                pl.BlockSpec((1, tn), im_n)]
    if has_proj:
        in_specs += [pl.BlockSpec((tm, Cp), im_m),
                     pl.BlockSpec((Cp, tn), im_n),
                     pl.BlockSpec((1, tn), im_n)]

    # ---- VMEM budget (double-buffered) + cost estimate ------------------------
    out_bytes = jnp.dtype(out_dtype).itemsize
    foot = 2 * (tm * tk * 2 + tk * tn * 2 + tn * 4 + tm * tn * out_bytes)
    if has_proj:
        foot += 2 * (tm * Cp * 2 + Cp * tn * 2 + tn * 4)
    if multi_k:
        foot += tm * tn * 4
    # 32 MiB floor is safe on every generation; 48 MiB cap leaves headroom on v7x
    # (64 MiB physical) for Mosaic internal scratch.
    vmem_limit = int(min(48 * 2 ** 20, max(32 * 2 ** 20, 2 * foot)))

    flops = 2 * Mp * Kp * Np + (2 * Mp * Cp * Np if has_proj else 0)
    bytes_accessed = (Mp * Kp * 2 + Kp * Np * 2 + Np * 4 + Mp * Np * out_bytes
                      + ((Mp * Cp * 2 + Cp * Np * 2 + Np * 4) if has_proj else 0))

    kernel = _make_gemm_kernel(neg_slope=neg_slope, out_scale=out_scale,
                               has_proj=has_proj, multi_k=multi_k)

    out = pl.pallas_call(
        kernel,
        out_shape=jax.ShapeDtypeStruct((Mp, Np), out_dtype),
        grid=grid,
        in_specs=in_specs,
        out_specs=pl.BlockSpec((tm, tn), im_o),
        scratch_shapes=scratch,
        compiler_params=pltpu.CompilerParams(
            dimension_semantics=dim_sem, vmem_limit_bytes=vmem_limit),
        cost_estimate=pl.CostEstimate(flops=flops, transcendentals=0,
                                      bytes_accessed=bytes_accessed),
    )(*args)

    return out[:M, :cout].reshape(B, oh, ow, cout)


# ----------------------------------------------------------------------------
# Parameters (deterministic synthetic, PyTorch Conv2d layout) + one-time packing
# ----------------------------------------------------------------------------
def init_params(key, inplanes, planes, kernel_size=3):
    def conv(k, cout, cin, kh, kw):
        kw_, kb_ = jax.random.split(k)
        fan_in = cin * kh * kw
        bound = 1.0 / math.sqrt(fan_in)
        w = jax.random.uniform(kw_, (cout, cin, kh, kw), jnp.float32, -bound, bound)
        b = jax.random.uniform(kb_, (cout,), jnp.float32, -bound, bound)
        return w, b

    k1, k2, k3 = jax.random.split(key, 3)
    c1w, c1b = conv(k1, planes, inplanes + 2, kernel_size, kernel_size)
    c2w, c2b = conv(k2, planes, planes + 2, kernel_size, kernel_size)
    pw, pb = conv(k3, planes, inplanes, 1, 1)
    return {"conv1_w": c1w, "conv1_b": c1b, "conv2_w": c2w, "conv2_b": c2b,
            "proj_w": pw, "proj_b": pb}


def prepare_params(raw):
    """Pack once: (Cout,Cin,kh,kw) -> bf16 (Kp, Np) GEMM matrix + f32 (1, Np) bias.

    K pads only to 16 (bf16 sublane) when it fits in one K block (tk == Kp uses the
    full-dim BlockSpec exception); N pads to 128, or 256 on 256-wide-MXU chips when
    cout > 128.  "n"/"k" are kept as Python ints (static shapes under jit).
    """
    wide_n = _prefer_wide_n()

    def pack(w, b):
        cout, cin, kh, kw = w.shape
        K = cin * kh * kw
        Kp = _rup(K, 16) if K <= 512 else _rup(K, 128)
        n_align = 256 if (wide_n and cout > 128) else 128
        Np = _rup(cout, n_align)
        wmat = jnp.transpose(w, (2, 3, 1, 0)).reshape(K, cout)  # row = (ki*kw+kj)*Cin+ci
        w_pad = jnp.zeros((Kp, Np), jnp.bfloat16).at[:K, :cout].set(
            wmat.astype(jnp.bfloat16))
        b_pad = jnp.zeros((1, Np), jnp.float32).at[0, :cout].set(b)
        return {"w": w_pad, "b": b_pad, "n": cout, "k": K}

    return {"conv1": pack(raw["conv1_w"], raw["conv1_b"]),
            "conv2": pack(raw["conv2_w"], raw["conv2_b"]),
            "proj": pack(raw["proj_w"], raw["proj_b"])}


# ----------------------------------------------------------------------------
# Forward (mirrors ResidualCCBlock.forward)
# ----------------------------------------------------------------------------
def residual_cc_block_forward(params, x_nchw, kernel_size=3, negative_slope=0.2):
    """y = (LReLU(CoordConv_s2(LReLU(CoordConv(x)))) + proj(x)) / sqrt(2)."""
    B, Cin, H, W = x_nchw.shape
    pad = kernel_size // 2
    planes = params["conv1"]["n"]

    x = jnp.transpose(x_nchw, (0, 2, 3, 1))                  # NCHW -> NHWC, once

    # network[0:2]: CoordConv(inplanes, planes, k, padding=p) + LeakyReLU(0.2)
    h = conv2d_gemm(_add_coords_nhwc(x), params["conv1"],
                    kernel_size=kernel_size, stride=1, padding=pad,
                    neg_slope=negative_slope, out_dtype=jnp.bfloat16)

    # proj operand: 1x1 stride-2 subsample of the ORIGINAL input, rows in the same
    # (b, oh, ow) order as the conv2 im2col rows.
    oh2 = (H - 1) // 2 + 1
    ow2 = (W - 1) // 2 + 1
    xs = x[:, ::2, ::2, :].reshape(B * oh2 * ow2, Cin)

    # network[2:4] + proj + /sqrt(2): the stride-2 CoordConv GEMM fuses LeakyReLU,
    # the 1x1 stride-2 projection residual and the 1/sqrt(2) scale in its epilogue.
    y = conv2d_gemm(_add_coords_nhwc(h), params["conv2"],
                    kernel_size=kernel_size, stride=2, padding=pad,
                    neg_slope=negative_slope, proj=(xs, params["proj"]),
                    out_scale=INV_SQRT2, out_dtype=jnp.float32)
    assert y.shape == (B, oh2, ow2, planes)
    return jnp.transpose(y, (0, 3, 1, 2))                    # NHWC -> NCHW, once


# ----------------------------------------------------------------------------
# Pure-XLA f32 reference for a correctness cross-check
# ----------------------------------------------------------------------------
def _ref_forward(raw, x, kernel_size=3, negative_slope=0.2):
    pad = kernel_size // 2

    def conv(t, w, b, stride, padding):
        y = jax.lax.conv_general_dilated(
            t, w, window_strides=(stride, stride),
            padding=((padding, padding), (padding, padding)),
            dimension_numbers=("NCHW", "OIHW", "NCHW"))
        return y + b[None, :, None, None]

    def addcoords(t):
        B, _, H, W = t.shape
        ii = (jnp.arange(H, dtype=jnp.float32) / (H - 1)) * 2.0 - 1.0
        jj = (jnp.arange(W, dtype=jnp.float32) / (W - 1)) * 2.0 - 1.0
        xx = jnp.broadcast_to(ii[None, None, :, None], (B, 1, H, W))
        yy = jnp.broadcast_to(jj[None, None, None, :], (B, 1, H, W))
        return jnp.concatenate([t, xx, yy], axis=1)

    lrelu = lambda t: jnp.where(t >= 0, t, negative_slope * t)
    h = lrelu(conv(addcoords(x), raw["conv1_w"], raw["conv1_b"], 1, pad))
    yb = lrelu(conv(addcoords(h), raw["conv2_w"], raw["conv2_b"], 2, pad))
    ident = conv(x, raw["proj_w"], raw["proj_b"], 2, 0)
    return (yb + ident) * INV_SQRT2


# ----------------------------------------------------------------------------
if __name__ == "__main__":
    key = jax.random.PRNGKey(0)
    kp, kx = jax.random.split(key)

    B, inplanes, planes, H, W = 2, 4, 8, 16, 16
    raw = init_params(kp, inplanes, planes, kernel_size=3)
    params = prepare_params(raw)
    x = jax.random.normal(kx, (B, inplanes, H, W), jnp.float32)

    # Close over params so the Python-int metadata ("n", "k") stays static under jit.
    fwd = jax.jit(functools.partial(residual_cc_block_forward, params))
    y = fwd(x)
    jax.block_until_ready(y)

    assert y.shape == (B, planes, H // 2, W // 2), y.shape
    assert bool(jnp.all(jnp.isfinite(y)))

    # Cross-check against the f32 XLA reference (bf16 MXU inputs -> loose tolerance).
    y_ref = _ref_forward(raw, x)
    err = float(jnp.max(jnp.abs(y - y_ref)))
    assert err < 0.2, f"max abs err {err}"

    print("KERNEL_OK")
</pallas_src>

<mosaic_0001>
module attributes {stable_mosaic.version = 11 : i64} {
  func.func @kernel(%arg0: i32, %arg1: i32, %arg2: memref<256x64xbf16, #tpu.memory_space<vmem>>, %arg3: memref<64x128xbf16, #tpu.memory_space<vmem>>, %arg4: memref<1x128xf32, #tpu.memory_space<vmem>>, %arg5: memref<256x128xbf16, #tpu.memory_space<vmem>>) attributes {dimension_semantics = [#tpu.dimension_semantics<parallel>, #tpu.dimension_semantics<parallel>], iteration_bounds = array<i64: 2, 1>, scalar_prefetch = 0 : i64, scratch_operands = 0 : i64, tpu.core_type = #tpu.core_type<tc>, window_params = [{transform_indices = @transform_0, window_bounds = array<i64: 256, 64>}, {transform_indices = @transform_1, window_bounds = array<i64: 64, 128>}, {transform_indices = @transform_2, window_bounds = array<i64: 1, 128>}, {transform_indices = @transform_3, window_bounds = array<i64: 256, 128>}]} {
    %c0 = arith.constant 0 : index
    %c0_0 = arith.constant 0 : index
    %0 = vector.load %arg2[%c0, %c0_0] : memref<256x64xbf16, #tpu.memory_space<vmem>>, vector<256x64xbf16>
    %c0_1 = arith.constant 0 : index
    %c0_2 = arith.constant 0 : index
    %1 = vector.load %arg3[%c0_1, %c0_2] : memref<64x128xbf16, #tpu.memory_space<vmem>>, vector<64x128xbf16>
    %cst = arith.constant dense<0.000000e+00> : vector<256x128xf32>
    %2 = tpu.matmul %0, %1, %cst {dimension_numbers = #tpu.dot_dimension_numbers<[1], [0], [0], [1], [0, 0, 1, 1], [], []>} : vector<256x64xbf16>, vector<64x128xbf16>, vector<256x128xf32> -> vector<256x128xf32>
    %c0_3 = arith.constant 0 : index
    %c0_4 = arith.constant 0 : index
    %3 = vector.load %arg4[%c0_3, %c0_4] : memref<1x128xf32, #tpu.memory_space<vmem>>, vector<1x128xf32>
    %4 = vector.broadcast %3 : vector<1x128xf32> to vector<256x128xf32>
    %5 = arith.addf %2, %4 : vector<256x128xf32>
    %cst_5 = arith.constant 0.000000e+00 : f32
    %6 = vector.broadcast %cst_5 : f32 to vector<256x128xf32>
    %7 = arith.cmpf oge, %5, %6 : vector<256x128xf32>
    %cst_6 = arith.constant 2.000000e-01 : f32
    %8 = vector.broadcast %cst_6 : f32 to vector<256x128xf32>
    %9 = arith.mulf %5, %8 : vector<256x128xf32>
    %10 = arith.select %7, %5, %9 : vector<256x128xi1>, vector<256x128xf32>
    %11 = arith.truncf %10 : vector<256x128xf32> to vector<256x128xbf16>
    %c0_7 = arith.constant 0 : index
    %c0_8 = arith.constant 0 : index
    %12 = vector.load %arg5[%c0_7, %c0_8] : memref<256x128xbf16, #tpu.memory_space<vmem>>, vector<256x128xbf16>
    tpu.vector_store %arg5[%c0_7, %c0_8], %11 {strides = array<i32>} : memref<256x128xbf16, #tpu.memory_space<vmem>>, vector<256x128xbf16>,
    return
  }
  func.func @transform_0(%arg0: i32, %arg1: i32) -> (i32, i32) {
    %c0_i32 = arith.constant 0 : i32
    %c0_i32_0 = arith.constant 0 : i32
    return %arg0, %c0_i32 : i32, i32
  }
  func.func @transform_1(%arg0: i32, %arg1: i32) -> (i32, i32) {
    %c0_i32 = arith.constant 0 : i32
    %c0_i32_0 = arith.constant 0 : i32
    return %c0_i32, %arg1 : i32, i32
  }
  func.func @transform_2(%arg0: i32, %arg1: i32) -> (i32, i32) {
    %c0_i32 = arith.constant 0 : i32
    %c0_i32_0 = arith.constant 0 : i32
    return %c0_i32, %arg1 : i32, i32
  }
  func.func @transform_3(%arg0: i32, %arg1: i32) -> (i32, i32) {
    %c0_i32 = arith.constant 0 : i32
    return %arg0, %arg1 : i32, i32
  }
}

module attributes {stable_mosaic.version = 11 : i64} {
  func.func @kernel(%arg0: i32, %arg1: i32, %arg2: memref<64x96xbf16, #tpu.memory_space<vmem>>, %arg3: memref<96x128xbf16, #tpu.memory_space<vmem>>, %arg4: memref<1x128xf32, #tpu.memory_space<vmem>>, %arg5: memref<64x16xbf16, #tpu.memory_space<vmem>>, %arg6: memref<16x128xbf16, #tpu.memory_space<vmem>>, %arg7: memref<1x128xf32, #tpu.memory_space<vmem>>, %arg8: memref<64x128xf32, #tpu.memory_space<vmem>>) attributes {dimension_semantics = [#tpu.dimension_semantics<parallel>, #tpu.dimension_semantics<parallel>], iteration_bounds = array<i64: 2, 1>, scalar_prefetch = 0 : i64, scratch_operands = 0 : i64, tpu.core_type = #tpu.core_type<tc>, window_params = [{transform_indices = @transform_0, window_bounds = array<i64: 64, 96>}, {transform_indices = @transform_1, window_bounds = array<i64: 96, 128>}, {transform_indices = @transform_2, window_bounds = array<i64: 1, 128>}, {transform_indices = @transform_3, window_bounds = array<i64: 64, 16>}, {transform_indices = @transform_4, window_bounds = array<i64: 16, 128>}, {transform_indices = @transform_5, window_bounds = array<i64: 1, 128>}, {transform_indices = @transform_6, window_bounds = array<i64: 64, 128>}]} {
    %c0 = arith.constant 0 : index
    %c0_0 = arith.constant 0 : index
    %0 = vector.load %arg2[%c0, %c0_0] : memref<64x96xbf16, #tpu.memory_space<vmem>>, vector<64x96xbf16>
    %c0_1 = arith.constant 0 : index
    %c0_2 = arith.constant 0 : index
    %1 = vector.load %arg3[%c0_1, %c0_2] : memref<96x128xbf16, #tpu.memory_space<vmem>>, vector<96x128xbf16>
    %cst = arith.constant dense<0.000000e+00> : vector<64x128xf32>
    %2 = tpu.matmul %0, %1, %cst {dimension_numbers = #tpu.dot_dimension_numbers<[1], [0], [0], [1], [0, 0, 1, 1], [], []>} : vector<64x96xbf16>, vector<96x128xbf16>, vector<64x128xf32> -> vector<64x128xf32>
    %c0_3 = arith.constant 0 : index
    %c0_4 = arith.constant 0 : index
    %3 = vector.load %arg4[%c0_3, %c0_4] : memref<1x128xf32, #tpu.memory_space<vmem>>, vector<1x128xf32>
    %4 = vector.broadcast %3 : vector<1x128xf32> to vector<64x128xf32>
    %5 = arith.addf %2, %4 : vector<64x128xf32>
    %cst_5 = arith.constant 0.000000e+00 : f32
    %6 = vector.broadcast %cst_5 : f32 to vector<64x128xf32>
    %7 = arith.cmpf oge, %5, %6 : vector<64x128xf32>
    %cst_6 = arith.constant 2.000000e-01 : f32
    %8 = vector.broadcast %cst_6 : f32 to vector<64x128xf32>
    %9 = arith.mulf %5, %8 : vector<64x128xf32>
    %10 = arith.select %7, %5, %9 : vector<64x128xi1>, vector<64x128xf32>
    %c0_7 = arith.constant 0 : index
    %c0_8 = arith.constant 0 : index
    %11 = vector.load %arg5[%c0_7, %c0_8] : memref<64x16xbf16, #tpu.memory_space<vmem>>, vector<64x16xbf16>
    %c0_9 = arith.constant 0 : index
    %c0_10 = arith.constant 0 : index
    %12 = vector.load %arg6[%c0_9, %c0_10] : memref<16x128xbf16, #tpu.memory_space<vmem>>, vector<16x128xbf16>
    %cst_11 = arith.constant dense<0.000000e+00> : vector<64x128xf32>
    %13 = tpu.matmul %11, %12, %cst_11 {dimension_numbers = #tpu.dot_dimension_numbers<[1], [0], [0], [1], [0, 0, 1, 1], [], []>} : vector<64x16xbf16>, vector<16x128xbf16>, vector<64x128xf32> -> vector<64x128xf32>
    %c0_12 = arith.constant 0 : index
    %c0_13 = arith.constant 0 : index
    %14 = vector.load %arg7[%c0_12, %c0_13] : memref<1x128xf32, #tpu.memory_space<vmem>>, vector<1x128xf32>
    %15 = vector.broadcast %14 : vector<1x128xf32> to vector<64x128xf32>
    %16 = arith.addf %13, %15 : vector<64x128xf32>
    %17 = arith.addf %10, %16 : vector<64x128xf32>
    %cst_14 = arith.constant 0.707106769 : f32
    %18 = vector.broadcast %cst_14 : f32 to vector<64x128xf32>
    %19 = arith.mulf %17, %18 : vector<64x128xf32>
    %c0_15 = arith.constant 0 : index
    %c0_16 = arith.constant 0 : index
    %20 = vector.load %arg8[%c0_15, %c0_16] : memref<64x128xf32, #tpu.memory_space<vmem>>, vector<64x128xf32>
    tpu.vector_store %arg8[%c0_15, %c0_16], %19 {strides = array<i32>} : memref<64x128xf32, #tpu.memory_space<vmem>>, vector<64x128xf32>,
    return
  }
  func.func @transform_0(%arg0: i32, %arg1: i32) -> (i32, i32) {
    %c0_i32 = arith.constant 0 : i32
    %c0_i32_0 = arith.constant 0 : i32
    return %arg0, %c0_i32 : i32, i32
  }
  func.func @transform_1(%arg0: i32, %arg1: i32) -> (i32, i32) {
    %c0_i32 = arith.constant 0 : i32
    %c0_i32_0 = arith.constant 0 : i32
    return %c0_i32, %arg1 : i32, i32
  }
  func.func @transform_2(%arg0: i32, %arg1: i32) -> (i32, i32) {
    %c0_i32 = arith.constant 0 : i32
    %c0_i32_0 = arith.constant 0 : i32
    return %c0_i32, %arg1 : i32, i32
  }
  func.func @transform_3(%arg0: i32, %arg1: i32) -> (i32, i32) {
    %c0_i32 = arith.constant 0 : i32
    %c0_i32_0 = arith.constant 0 : i32
    return %arg0, %c0_i32 : i32, i32
  }
  func.func @transform_4(%arg0: i32, %arg1: i32) -> (i32, i32) {
    %c0_i32 = arith.constant 0 : i32
    %c0_i32_0 = arith.constant 0 : i32
    return %c0_i32, %arg1 : i32, i32
  }
  func.func @transform_5(%arg0: i32, %arg1: i32) -> (i32, i32) {
    %c0_i32 = arith.constant 0 : i32
    %c0_i32_0 = arith.constant 0 : i32
    return %c0_i32, %arg1 : i32, i32
  }
  func.func @transform_6(%arg0: i32, %arg1: i32) -> (i32, i32) {
    %c0_i32 = arith.constant 0 : i32
    return %arg0, %arg1 : i32, i32
  }
}

</mosaic_0001>

<bundles_post_ra>
// kernel: residual_cc_block_forward.2
= control target key start
LH: loop header
LB: loop body
LE: loop exit
PB: predicated region body
PF: predicated region fallthrough
CT: control target
= control target key end

     0   :  { %s1310_s12 = smov 0   ;;  %s1312_s13 = smov 0   ;;  %s1457_s0 = inlined_call_operand.vmem [shape: bf16[512,64], index: 0, kind: input, shape index: {}]   ;;  %s1458_s1 = inlined_call_operand.vmem [shape: bf16[64,128], index: 1, kind: input, shape index: {}]   ;;  %s1459_s2 = inlined_call_operand.vmem [shape: f32[1,128], index: 2, kind: input, shape index: {}]   ;;  %s1460_s3 = inlined_call_operand.vmem [shape: bf16[512,128], index: 3, kind: output, shape index: {}]  }
   0x1   :  { %s1314_s14 = smov 0  }
   0x2 LB: > { %s25_s15 = sadd.s32 1, %s1284_s13  ;;  %p951_p0 = scmp.ge.s32.totalorder %s1288_s14, 1  ;;  %s1288_s14 = sphi %s1314_s14, %s13_s14   ;;  %s1284_s13 = sphi %s1312_s13, %s1462_s13   ;;  %s1280_s12 = sphi %s1310_s12, %s1461_s12  }
   0x3   : > { %p27_p1 = scmp.ge.s32.totalorder %s25_s15, 2  ;;  %p169_p2 = scmp.lt.s32.totalorder %s1288_s14, 3 }
   0x5   : > { %s1464_s15 = smov (%p27_p1, %s25_s15), 0  ;;  %p170_p3 = pnand %p951_p0, %p169_p2 }
   0x6   : > { %v1246_v0 = vld [vmem:[%s1458_s1] sm:$0xff] (!%p170_p3)   ;;  %s952_s18 = sshll.u32 (!%p170_p3), %s1280_s12, 5  ;;  %v1247_v1 = vld [vmem:[%s1458_s1 + $0x8] sm:$0xff] (!%p170_p3)   ;;  %v1248_v2 = vld [vmem:[%s1458_s1 + $0x10] sm:$0xff] (!%p170_p3)   ;;  %vm377_vm0 = vcmask (!%p170_p3), 523264  }
   0x7   : > { %173 = sbr.rel (%p170_p3) target bundleno = 278 (0x116), region = 32  ;;  %p204_p4 = scmp.lt.s32.totalorder (!%p170_p3), %s952_s18, 63  ;;  %1174 = vmatprep.subr.bf16.mxu0 (!%p170_p3), %v1246_v0  ;;  %1214 = vmatprep.subr.bf16.mxu1 (!%p170_p3), %v1246_v0  ;;  %v1249_v3 = vld [vmem:[%s1458_s1 + $0x18] sm:$0xff] (!%p170_p3)   ;;  %v1385_v20 = vld [vmem:[%s1459_s2] ss:$0 sm:$0xff] (!%p170_p3) }
   0x8   : > { %1175 = vmatpush3.bf16.msra.mxu0 (!%p170_p3), %v1246_v0  ;;  %1218 = vmatpush3.bf16.msra.mxu1 (!%p170_p3), %v1246_v0 }
   0x9   : > { %1176 = vmatprep.subr.bf16.mxu0 (!%p170_p3), %v1247_v1  ;;  %1215 = vmatprep.subr.bf16.mxu1 (!%p170_p3), %v1247_v1 }
   0xc   : > { %1177 = vmatpush3.bf16.msra.mxu0 (!%p170_p3), %v1247_v1  ;;  %1219 = vmatpush3.bf16.msra.mxu1 (!%p170_p3), %v1247_v1 }
   0xd   : > { %1178 = vmatprep.subr.bf16.mxu0 (!%p170_p3), %v1248_v2  ;;  %1216 = vmatprep.subr.bf16.mxu1 (!%p170_p3), %v1248_v2 }
   0xe   : > { %s1466_s18 = smov (!%p204_p4, %s952_s18), 63 }
   0xf   : > { %s953_s23 = sshll.u32 %s1466_s18, 2 }
  0x10   : > { %s1348_s28 = scalar_lea.vmem %s1457_s0, %s953_s23  ;;  %1179 = vmatpush3.bf16.msra.mxu0 %v1248_v2  ;;  %1220 = vmatpush3.bf16.msra.mxu1 %v1248_v2  ;;  %s1402_s6 = scalar_lea.vmem %s1460_s3, %s953_s23 }
  0x11   : > { %v1250_v4 = vld [vmem:[%s1348_s28] sm:$0xff]   ;;  %1180 = vmatprep.subr.bf16.mxu0 %v1249_v3  ;;  %1217 = vmatprep.subr.bf16.mxu1 %v1249_v3  ;;  %v1252_v6 = vld [vmem:[%s1348_s28 + $0x8] sm:$0xff]   ;;  %v1254_v8 = vld [vmem:[%s1348_s28 + $0x10] sm:$0xff]  }
  0x12   : > { %v1251_v5 = vld [vmem:[%s1348_s28 + $0x40] sm:$0xff]   ;;  %1182 = vmatprep.mubr.msk.bf16.mxu0 %vm377_vm0, %v1250_v4  ;;  %v1253_v7 = vld [vmem:[%s1348_s28 + $0x48] sm:$0xff]   ;;  %v1255_v9 = vld [vmem:[%s1348_s28 + $0x50] sm:$0xff]  }
  0x13   : > { %1198 = vmatprep.mubr.msk.bf16.mxu1 %vm377_vm0, %v1251_v5  ;;  %v1256_v10 = vld [vmem:[%s1348_s28 + $0x18] sm:$0xff]   ;;  %v1258_v12 = vld [vmem:[%s1348_s28 + $0x20] sm:$0xff]   ;;  %v1260_v14 = vld [vmem:[%s1348_s28 + $0x28] sm:$0xff]  }
  0x14   : > { %1181 = vmatpush3.bf16.msra.mxu0 %v1249_v3  ;;  %1221 = vmatpush3.bf16.msra.mxu1 %v1249_v3  ;;  %v1257_v11 = vld [vmem:[%s1348_s28 + $0x58] sm:$0xff]   ;;  %v1259_v13 = vld [vmem:[%s1348_s28 + $0x60] sm:$0xff]   ;;  %v1261_v15 = vld [vmem:[%s1348_s28 + $0x68] sm:$0xff]  }
  0x15   : > { %v1262_v16 = vld [vmem:[%s1348_s28 + $0x30] sm:$0xff]   ;;  %v1264_v18 = vld [vmem:[%s1348_s28 + $0x38] sm:$0xff]  }
  0x16   : > { %v1263_v17 = vld [vmem:[%s1348_s28 + $0x70] sm:$0xff]   ;;  %v1265_v19 = vld [vmem:[%s1348_s28 + $0x78] sm:$0xff]  }
  0x17   : > { %1183 = vmatmul.mubr.msk.bf16.vlgmr.msra.gmra.mrb[0].mxu0 %vm377_vm0, %v1252_v6  ;;  %1199 = vmatmul.mubr.msk.bf16.vlgmr.msra.gmra.mrb[0].mxu1 %vm377_vm0, %v1253_v7 }
  0x18   : > { %1186 = vmatprep.mubr.msk.bf16.mxu0 %vm377_vm0, %v1254_v8  ;;  %1202 = vmatprep.mubr.msk.bf16.mxu1 %vm377_vm0, %v1255_v9 }
  0x1f   : > { %1187 = vmatmul.mubr.msk.bf16.gmra.mrb[4].mxu0 %vm377_vm0, %v1256_v10  ;;  %1203 = vmatmul.mubr.msk.bf16.gmra.mrb[4].mxu1 %vm377_vm0, %v1257_v11 }
  0x20   : > { %1190 = vmatprep.mubr.msk.bf16.mxu0 %vm377_vm0, %v1258_v12  ;;  %1206 = vmatprep.mubr.msk.bf16.mxu1 %vm377_vm0, %v1259_v13 }
  0x27   : > { %1191 = vmatmul.mubr.msk.bf16.gmra.mrb[8].mxu0 %vm377_vm0, %v1260_v14  ;;  %1207 = vmatmul.mubr.msk.bf16.gmra.mrb[8].mxu1 %vm377_vm0, %v1261_v15 }
  0x28   : > { %1194 = vmatprep.mubr.msk.bf16.mxu0 %vm377_vm0, %v1262_v16  ;;  %1210 = vmatprep.mubr.msk.bf16.mxu1 %vm377_vm0, %v1263_v17 }
  0x2f   : > { %1195 = vmatmul.mubr.msk.bf16.gmra.mrb[12].mxu0 %vm377_vm0, %v1264_v18  ;;  %1211 = vmatmul.mubr.msk.bf16.gmra.mrb[12].mxu1 %vm377_vm0, %v1265_v19 }
  0xea   : > { %v1184_v21 = vpop.f32.mrb[0].mxu0  ;;  %v1200_v22 = vpop.f32.mrb[0].mxu1 }
  0xeb   : > { %v469_v23 = vadd.f32 %v1184_v21, %v1385_v20  ;;  %v533_v24 = vadd.f32 %v1200_v22, %v1385_v20  ;;  %v460_v25 = vpop.f32.mrb[1].mxu0  ;;  %v524_v26 = vpop.f32.mrb[1].mxu1 }
  0xec   : > { %v461_v27 = vadd.f32 %v1385_v20, %v460_v25  ;;  %v525_v28 = vadd.f32 %v1385_v20, %v524_v26  ;;  %v1185_v29 = vpop.f32.mrb[2].mxu0  ;;  %v1201_v30 = vpop.f32.mrb[2].mxu1 }
  0xed   : > { %vm589_vm1 = vcmp.ge.f32.partialorder %v469_v23, 0.0  ;;  %v621_v31 = vmul.f32 0.2, %v469_v23  ;;  %vm605_vm2 = vcmp.ge.f32.partialorder %v533_v24, 0.0  ;;  %v637_v32 = vmul.f32 0.2, %v533_v24 }
  0xee   : > { %vm587_vm3 = vcmp.ge.f32.partialorder %v461_v27, 0.0  ;;  %v619_v33 = vmul.f32 0.2, %v461_v27  ;;  %vm603_vm4 = vcmp.ge.f32.partialorder %v525_v28, 0.0  ;;  %v635_v34 = vmul.f32 0.2, %v525_v28 }
  0xef   : > { %v472_v35 = vadd.f32 %v1185_v29, %v1385_v20  ;;  %v536_v36 = vadd.f32 %v1201_v30, %v1385_v20  ;;  %v463_v37 = vpop.f32.mrb[3].mxu0  ;;  %v527_v38 = vpop.f32.mrb[3].mxu1  ;;  %v653_v39 = vsel %vm589_vm1, %v469_v23, %v621_v31  ;;  %v669_v40 = vsel %vm605_vm2, %v533_v24, %v637_v32 }
  0xf0   : > { %v464_v41 = vadd.f32 %v1385_v20, %v463_v37  ;;  %v528_v42 = vadd.f32 %v1385_v20, %v527_v38  ;;  %v651_v47 = vsel %vm587_vm3, %v461_v27, %v619_v33  ;;  %v667_v48 = vsel %vm603_vm4, %v525_v28, %v635_v34 }
  0xf1   : > { %vm590_vm5 = vcmp.ge.f32.partialorder %v472_v35, 0.0  ;;  %v622_v43 = vmul.f32 0.2, %v472_v35  ;;  %vm606_vm6 = vcmp.ge.f32.partialorder %v536_v36, 0.0  ;;  %v638_v44 = vmul.f32 0.2, %v536_v36 }
  0xf2   : > { %vm588_vm7 = vcmp.ge.f32.partialorder %v464_v41, 0.0  ;;  %v620_v45 = vmul.f32 0.2, %v464_v41  ;;  %vm604_vm8 = vcmp.ge.f32.partialorder %v528_v42, 0.0  ;;  %v636_v46 = vmul.f32 0.2, %v528_v42 }
  0xf3   : > { %v654_v49 = vsel %vm590_vm5, %v472_v35, %v622_v43  ;;  %v670_v50 = vsel %vm606_vm6, %v536_v36, %v638_v44  ;;  %v1188_v51 = vpop.f32.mrb[4].mxu0  ;;  %v1204_v52 = vpop.f32.mrb[4].mxu1 }
  0xf4   : > { %v1067_v53 = vpack.c.bf16 %v654_v49, %v653_v39  ;;  %v1107_v54 = vpack.c.bf16 %v670_v50, %v669_v40  ;;  %v652_v55 = vsel %vm588_vm7, %v464_v41, %v620_v45  ;;  %v668_v56 = vsel %vm604_vm8, %v528_v42, %v636_v46  ;;  %v476_v57 = vpop.f32.mrb[5].mxu0  ;;  %v540_v58 = vpop.f32.mrb[5].mxu1 }
  0xf5   : > { %v1062_v59 = vpack.c.bf16 %v652_v55, %v651_v47  ;;  %v1102_v60 = vpack.c.bf16 %v668_v56, %v667_v48  ;;  %v485_v61 = vadd.f32 %v1188_v51, %v1385_v20  ;;  %v549_v62 = vadd.f32 %v1204_v52, %v1385_v20  ;;  %v1189_v63 = vpop.f32.mrb[6].mxu0  ;;  %v1205_v0 = vpop.f32.mrb[6].mxu1 }
  0xf6   : > { %1139 = vst [vmem:[%s1402_s6 + $0x8] sm:$0xff] %v1067_v53   ;;  %1147 = vst [vmem:[%s1402_s6 + $0x48] sm:$0xff] %v1107_v54   ;;  %v477_v1 = vadd.f32 %v1385_v20, %v476_v57  ;;  %v541_v2 = vadd.f32 %v1385_v20, %v540_v58  ;;  %v488_v3 = vadd.f32 %v1189_v63, %v1385_v20  ;;  %v479_v5 = vpop.f32.mrb[7].mxu0  ;;  %v543_v6 = vpop.f32.mrb[7].mxu1 }
  0xf7   : > { %v552_v4 = vadd.f32 %v1205_v0, %v1385_v20  ;;  %1063 = vst [vmem:[%s1402_s6] sm:$0xff] %v1062_v59   ;;  %1146 = vst [vmem:[%s1402_s6 + $0x40] sm:$0xff] %v1102_v60   ;;  %vm593_vm9 = vcmp.ge.f32.partialorder %v485_v61, 0.0  ;;  %v625_v7 = vmul.f32 0.2, %v485_v61  ;;  %vm609_vm10 = vcmp.ge.f32.partialorder %v549_v62, 0.0 }
  0xf8   : > { %v641_v8 = vmul.f32 0.2, %v549_v62  ;;  %vm591_vm11 = vcmp.ge.f32.partialorder %v477_v1, 0.0  ;;  %v623_v9 = vmul.f32 0.2, %v477_v1  ;;  %vm607_vm12 = vcmp.ge.f32.partialorder %v541_v2, 0.0 }
  0xf9   : > { %v657_v10 = vsel %vm593_vm9, %v485_v61, %v625_v7  ;;  %v639_v11 = vmul.f32 0.2, %v541_v2  ;;  %vm594_vm13 = vcmp.ge.f32.partialorder %v488_v3, 0.0  ;;  %v626_v12 = vmul.f32 0.2, %v488_v3 }
  0xfa   : > { %v673_v13 = vsel %vm609_vm10, %v549_v62, %v641_v8  ;;  %v655_v14 = vsel %vm591_vm11, %v477_v1, %v623_v9  ;;  %vm610_vm14 = vcmp.ge.f32.partialorder %v552_v4, 0.0  ;;  %v642_v15 = vmul.f32 0.2, %v552_v4  ;;  %v1192_v16 = vpop.f32.mrb[8].mxu0  ;;  %v1208_v17 = vpop.f32.mrb[8].mxu1 }
  0xfb   : > { %v658_v18 = vsel %vm594_vm13, %v488_v3, %v626_v12  ;;  %v480_v19 = vadd.f32 %v1385_v20, %v479_v5  ;;  %v544_v21 = vadd.f32 %v1385_v20, %v543_v6  ;;  %v501_v22 = vadd.f32 %v1192_v16, %v1385_v20  ;;  %v492_v23 = vpop.f32.mrb[9].mxu0  ;;  %v556_v24 = vpop.f32.mrb[9].mxu1 }
  0xfc   : > { %v1077_v25 = vpack.c.bf16 %v658_v18, %v657_v10  ;;  %v674_v26 = vsel %vm610_vm14, %v552_v4, %v642_v15  ;;  %v565_v27 = vadd.f32 %v1208_v17, %v1385_v20  ;;  %v493_v28 = vadd.f32 %v1385_v20, %v492_v23  ;;  %v1193_v29 = vpop.f32.mrb[10].mxu0  ;;  %v1209_v30 = vpop.f32.mrb[10].mxu1 }
  0xfd   : > { %v1117_v31 = vpack.c.bf16 %v674_v26, %v673_v13  ;;  %vm592_vm15 = vcmp.ge.f32.partialorder %v480_v19, 0.0  ;;  %v624_v32 = vmul.f32 0.2, %v480_v19  ;;  %vm608_vm0 = vcmp.ge.f32.partialorder %v544_v21, 0.0  ;;  %v495_v33 = vpop.f32.mrb[11].mxu0  ;;  %v559_v34 = vpop.f32.mrb[11].mxu1 }
  0xfe   : > { %1141 = vst [vmem:[%s1402_s6 + $0x18] sm:$0xff] %v1077_v25   ;;  %v640_v35 = vmul.f32 0.2, %v544_v21  ;;  %vm597_vm1 = vcmp.ge.f32.partialorder %v501_v22, 0.0  ;;  %v629_v36 = vmul.f32 0.2, %v501_v22  ;;  %v671_v37 = vsel %vm607_vm12, %v541_v2, %v639_v11 }
  0xff   : > { %vm613_vm2 = vcmp.ge.f32.partialorder %v565_v27, 0.0  ;;  %1149 = vst [vmem:[%s1402_s6 + $0x58] sm:$0xff] %v1117_v31   ;;  %v656_v38 = vsel %vm592_vm15, %v480_v19, %v624_v32  ;;  %v645_v39 = vmul.f32 0.2, %v565_v27  ;;  %vm595_vm3 = vcmp.ge.f32.partialorder %v493_v28, 0.0 }
 0x100   : > { %v1072_v40 = vpack.c.bf16 %v656_v38, %v655_v14  ;;  %v672_v41 = vsel %vm608_vm0, %v544_v21, %v640_v35  ;;  %v627_v42 = vmul.f32 0.2, %v493_v28  ;;  %v557_v43 = vadd.f32 %v1385_v20, %v556_v24 }
 0x101   : > { %v1112_v44 = vpack.c.bf16 %v672_v41, %v671_v37  ;;  %v661_v45 = vsel %vm597_vm1, %v501_v22, %v629_v36  ;;  %v677_v46 = vsel %vm613_vm2, %v565_v27, %v645_v39  ;;  %v504_v47 = vadd.f32 %v1193_v29, %v1385_v20 }
 0x102   : > { %1140 = vst [vmem:[%s1402_s6 + $0x10] sm:$0xff] %v1072_v40   ;;  %vm611_vm4 = vcmp.ge.f32.partialorder %v557_v43, 0.0  ;;  %v643_v48 = vmul.f32 0.2, %v557_v43  ;;  %v568_v49 = vadd.f32 %v1209_v30, %v1385_v20  ;;  %v496_v50 = vadd.f32 %v1385_v20, %v495_v33  ;;  %v1196_v51 = vpop.f32.mrb[12].mxu0  ;;  %v1212_v52 = vpop.f32.mrb[12].mxu1 }
 0x103   : > { %1148 = vst [vmem:[%s1402_s6 + $0x50] sm:$0xff] %v1112_v44   ;;  %vm598_vm5 = vcmp.ge.f32.partialorder %v504_v47, 0.0  ;;  %v630_v53 = vmul.f32 0.2, %v504_v47  ;;  %v560_v54 = vadd.f32 %v1385_v20, %v559_v34  ;;  %v517_v55 = vadd.f32 %v1196_v51, %v1385_v20  ;;  %v508_v56 = vpop.f32.mrb[13].mxu0  ;;  %v572_v57 = vpop.f32.mrb[13].mxu1 }
 0x104   : > { %v659_v58 = vsel %vm595_vm3, %v493_v28, %v627_v42  ;;  %vm614_vm6 = vcmp.ge.f32.partialorder %v568_v49, 0.0  ;;  %v646_v59 = vmul.f32 0.2, %v568_v49  ;;  %vm596_vm7 = vcmp.ge.f32.partialorder %v496_v50, 0.0  ;;  %v1197_v60 = vpop.f32.mrb[14].mxu0  ;;  %v1213_v61 = vpop.f32.mrb[14].mxu1 }
 0x105   : > { %v662_v62 = vsel %vm598_vm5, %v504_v47, %v630_v53  ;;  %v628_v63 = vmul.f32 0.2, %v496_v50  ;;  %vm612_vm8 = vcmp.ge.f32.partialorder %v560_v54, 0.0  ;;  %v644_v0 = vmul.f32 0.2, %v560_v54  ;;  %v511_v1 = vpop.f32.mrb[15].mxu0 }
 0x106   : > { %v675_v2 = vsel %vm611_vm4, %v557_v43, %v643_v48  ;;  %v1087_v3 = vpack.c.bf16 %v662_v62, %v661_v45  ;;  %v678_v4 = vsel %vm614_vm6, %v568_v49, %v646_v59  ;;  %v633_v5 = vmul.f32 0.2, %v517_v55  ;;  %v575_v6 = vpop.f32.mrb[15].mxu1 }
 0x107   : > { %v1127_v7 = vpack.c.bf16 %v678_v4, %v677_v46  ;;  %v660_v8 = vsel %vm596_vm7, %v496_v50, %v628_v63  ;;  %v676_v9 = vsel %vm612_vm8, %v560_v54, %v644_v0  ;;  %v581_v10 = vadd.f32 %v1212_v52, %v1385_v20 }
 0x108   : > { %1143 = vst [vmem:[%s1402_s6 + $0x28] sm:$0xff] %v1087_v3   ;;  %v1082_v11 = vpack.c.bf16 %v660_v8, %v659_v58  ;;  %v1122_v12 = vpack.c.bf16 %v676_v9, %v675_v2  ;;  %vm601_vm9 = vcmp.ge.f32.partialorder %v517_v55, 0.0  ;;  %v509_v13 = vadd.f32 %v1385_v20, %v508_v56 }
 0x109   : > { %1151 = vst [vmem:[%s1402_s6 + $0x68] sm:$0xff] %v1127_v7   ;;  %vm617_vm10 = vcmp.ge.f32.partialorder %v581_v10, 0.0  ;;  %v649_v14 = vmul.f32 0.2, %v581_v10  ;;  %v573_v15 = vadd.f32 %v1385_v20, %v572_v57  ;;  %v520_v16 = vadd.f32 %v1197_v60, %v1385_v20 }
 0x10a   : > { %1142 = vst [vmem:[%s1402_s6 + $0x20] sm:$0xff] %v1082_v11   ;;  %1150 = vst [vmem:[%s1402_s6 + $0x60] sm:$0xff] %v1122_v12   ;;  %v631_v17 = vmul.f32 0.2, %v509_v13  ;;  %v584_v18 = vadd.f32 %v1213_v61, %v1385_v20  ;;  %v512_v19 = vadd.f32 %v1385_v20, %v511_v1  ;;  %v665_v21 = vsel %vm601_vm9, %v517_v55, %v633_v5 }
 0x10b   : > { %vm599_vm11 = vcmp.ge.f32.partialorder %v509_v13, 0.0  ;;  %vm602_vm12 = vcmp.ge.f32.partialorder %v520_v16, 0.0  ;;  %v681_v22 = vsel %vm617_vm10, %v581_v10, %v649_v14  ;;  %v634_v23 = vmul.f32 0.2, %v520_v16 }
 0x10c   : > { %vm618_vm13 = vcmp.ge.f32.partialorder %v584_v18, 0.0  ;;  %v650_v24 = vmul.f32 0.2, %v584_v18  ;;  %vm615_vm14 = vcmp.ge.f32.partialorder %v573_v15, 0.0  ;;  %vm600_vm15 = vcmp.ge.f32.partialorder %v512_v19, 0.0 }
 0x10d   : > { %v632_v25 = vmul.f32 0.2, %v512_v19  ;;  %v576_v26 = vadd.f32 %v1385_v20, %v575_v6  ;;  %v663_v27 = vsel %vm599_vm11, %v509_v13, %v631_v17  ;;  %v647_v28 = vmul.f32 0.2, %v573_v15 }
 0x10e   : > { %v666_v29 = vsel %vm602_vm12, %v520_v16, %v634_v23  ;;  %v682_v30 = vsel %vm618_vm13, %v584_v18, %v650_v24 }
 0x10f   : > { %v1097_v31 = vpack.c.bf16 %v666_v29, %v665_v21  ;;  %v1137_v32 = vpack.c.bf16 %v682_v30, %v681_v22  ;;  %v664_v33 = vsel %vm600_vm15, %v512_v19, %v632_v25  ;;  %vm616_vm0 = vcmp.ge.f32.partialorder %v576_v26, 0.0 }
 0x110   : > { %v1092_v34 = vpack.c.bf16 %v664_v33, %v663_v27  ;;  %v648_v35 = vmul.f32 0.2, %v576_v26  ;;  %v679_v36 = vsel %vm615_vm14, %v573_v15, %v647_v28 }
 0x111   : > { %1145 = vst [vmem:[%s1402_s6 + $0x38] sm:$0xff] %v1097_v31   ;;  %1153 = vst [vmem:[%s1402_s6 + $0x78] sm:$0xff] %v1137_v32  }
 0x112   : > { %1144 = vst [vmem:[%s1402_s6 + $0x30] sm:$0xff] %v1092_v34   ;;  %v680_v37 = vsel %vm616_vm0, %v576_v26, %v648_v35 }
 0x113   : > { %v1132_v38 = vpack.c.bf16 %v680_v37, %v679_v36 }
 0x115   : > { %1152 = vst [vmem:[%s1402_s6 + $0x70] sm:$0xff] %v1132_v38  }
 0x116 PF: > { %s13_s14 = sadd.s32 1, %s1288_s14   ;;  %s1461_s12 = smov %s1284_s13 }
 0x117   : > { %p10_p5 = scmp.ge.s32.totalorder %s13_s14, 4   ;;  %s1462_s13 = smov %s1464_s15 }
 0x119   :  { %12 = sbr.rel (!%p10_p5) target bundleno = 2 (0x2), region = 68 }

// kernel: residual_cc_block_forward.3
= control target key start
LH: loop header
LB: loop body
LE: loop exit
PB: predicated region body
PF: predicated region fallthrough
CT: control target
= control target key end

     0   :  { %s1016_s21 = smov 0   ;;  %s1018_s22 = smov 0   ;;  %s1120_s0 = inlined_call_operand.vmem [shape: bf16[128,96], index: 0, kind: input, shape index: {}]   ;;  %s1121_s1 = inlined_call_operand.vmem [shape: bf16[96,128], index: 1, kind: input, shape index: {}]   ;;  %s1122_s2 = inlined_call_operand.vmem [shape: f32[1,128], index: 2, kind: input, shape index: {}]   ;;  %s1123_s3 = inlined_call_operand.vmem [shape: bf16[128,16], index: 3, kind: input, shape index: {}]   ;;  %s1124_s4 = inlined_call_operand.vmem [shape: bf16[16,128], index: 4, kind: input, shape index: {}]   ;;  %s1125_s5 = inlined_call_operand.vmem [shape: f32[1,128], index: 5, kind: input, shape index: {}]   ;;  %s1126_s6 = inlined_call_operand.vmem [shape: f32[128,128], index: 6, kind: output, shape index: {}]  }
   0x1   :  { %s1020_s23 = smov 0  }
   0x2 LB: > { %s28_s24 = sadd.s32 1, %s975_s22  ;;  %p839_p0 = scmp.ge.s32.totalorder %s979_s23, 1  ;;  %s979_s23 = sphi %s1020_s23, %s16_s23   ;;  %s975_s22 = sphi %s1018_s22, %s1128_s22   ;;  %s971_s21 = sphi %s1016_s21, %s1127_s21  }
   0x3   : > { %p30_p1 = scmp.ge.s32.totalorder %s28_s24, 2  ;;  %p272_p2 = scmp.lt.s32.totalorder %s979_s23, 3 }
   0x5   : > { %s1130_s24 = smov (%p30_p1, %s28_s24), 0  ;;  %p273_p3 = pnand %p839_p0, %p272_p2 }
   0x6   : > { %v942_v0 = vld [vmem:[%s1121_s1] sm:$0xff] (!%p273_p3)   ;;  %s840_s27 = sshll.u32 (!%p273_p3), %s971_s21, 3  ;;  %v943_v1 = vld [vmem:[%s1121_s1 + $0x8] sm:$0xff] (!%p273_p3)   ;;  %v944_v2 = vld [vmem:[%s1121_s1 + $0x10] sm:$0xff] (!%p273_p3)   ;;  %vm443_vm0 = vcmask (!%p273_p3), 785408   ;;  %vm588_vm1 = vcmask (!%p273_p3), 130048  }
   0x7   : > { %276 = sbr.rel (%p273_p3) target bundleno = 264 (0x108), region = 44  ;;  %p325_p4 = scmp.lt.s32.totalorder (!%p273_p3), %s840_s27, 15  ;;  %888 = vmatprep.subr.bf16.mxu0 (!%p273_p3), %v942_v0  ;;  %v945_v3 = vld [vmem:[%s1121_s1 + $0x18] sm:$0xff] (!%p273_p3)   ;;  %v948_v4 = vld [vmem:[%s1124_s4] sm:$0xff] (!%p273_p3)   ;;  %v947_v10 = vld [vmem:[%s1121_s1 + $0x28] sm:$0xff] (!%p273_p3)  }
   0x8   : > { %889 = vmatpush3.bf16.msra.mxu0 (!%p273_p3), %v942_v0  ;;  %908 = vmatprep.subr.bf16.mxu1 (!%p273_p3), %v948_v4  ;;  %v946_v8 = vld [vmem:[%s1121_s1 + $0x20] sm:$0xff] (!%p273_p3)  }
   0x9   : > { %890 = vmatprep.subr.bf16.mxu0 (!%p273_p3), %v943_v1  ;;  %909 = vmatpush3.bf16.msra.mxu1 (!%p273_p3), %v948_v4  ;;  %v846_v23 = vld [vmem:[%s1122_s2] ss:$0 sm:$0xff] (!%p273_p3) }
   0xa   : > { %v1086_v24 = vld [vmem:[%s1125_s5] ss:$0 sm:$0xff] (!%p273_p3) }
   0xc   : > { %891 = vmatpush3.bf16.msra.mxu0 (!%p273_p3), %v943_v1 }
   0xd   : > { %892 = vmatprep.subr.bf16.mxu0 (!%p273_p3), %v944_v2 }
   0xe   : > { %s1132_s27 = smov (!%p325_p4, %s840_s27), 15 }
   0xf   : > { %s841_s8 = sshll.u32 %s1132_s27, 2  ;;  %s845_s7 = sshll.u32 %s1132_s27, 3 }
  0x10   : > { %s1055_s15 = scalar_lea.vmem %s1120_s0, %s841_s8  ;;  %s341_s18 = scalar_lea.vmem %s1123_s3, %s841_s8  ;;  %893 = vmatpush3.bf16.msra.mxu0 %v944_v2 }
  0x11   : > { %v949_v5 = vld [vmem:[%s1055_s15] sm:$0xff]   ;;  %v952_v7 = vld [vmem:[%s341_s18 + $0x8] sm:$0xff]   ;;  %894 = vmatprep.subr.bf16.mxu0 %v945_v3  ;;  %v954_v9 = vld [vmem:[%s341_s18 + $0x10] sm:$0xff]   ;;  %s1095_s10 = scalar_lea.vmem %s1126_s6, %s845_s7 }
  0x12   : > { %v950_v6 = vld [vmem:[%s341_s18] sm:$0xff]   ;;  %900 = vmatprep.mubr.msk.bf16.mxu0 %vm443_vm0, %v949_v5  ;;  %v956_v11 = vld [vmem:[%s341_s18 + $0x18] sm:$0xff]   ;;  %v951_v12 = vld [vmem:[%s1055_s15 + $0x8] sm:$0xff]  }
  0x13   : > { %910 = vmatprep.mubr.msk.bf16.mxu1 %vm588_vm1, %v950_v6  ;;  %v953_v13 = vld [vmem:[%s1055_s15 + $0x10] sm:$0xff]   ;;  %v955_v14 = vld [vmem:[%s1055_s15 + $0x18] sm:$0xff]  }
  0x14   : > { %911 = vmatmul.mubr.msk.bf16.vlgmr.msra.gmra.mrb[0].mxu1 %vm588_vm1, %v952_v7  ;;  %895 = vmatpush3.bf16.msra.mxu0 %v945_v3 }
  0x15   : > { %914 = vmatprep.mubr.msk.bf16.mxu1 %vm588_vm1, %v954_v9  ;;  %896 = vmatprep.subr.bf16.mxu0 %v946_v8 }
  0x18   : > { %897 = vmatpush3.bf16.msra.mxu0 %v946_v8 }
  0x19   : > { %898 = vmatprep.subr.bf16.mxu0 %v947_v10 }
  0x1c   : > { %915 = vmatmul.mubr.msk.bf16.gmra.mrb[4].mxu1 %vm588_vm1, %v956_v11  ;;  %899 = vmatpush3.bf16.msra.mxu0 %v947_v10 }
  0x1f   : > { %901 = vmatmul.mubr.msk.bf16.vlgmr.msra.gmra.mrb[0].mxu0 %vm443_vm0, %v951_v12 }
  0x20   : > { %904 = vmatprep.mubr.msk.bf16.mxu0 %vm443_vm0, %v953_v13 }
  0x27   : > { %905 = vmatmul.mubr.msk.bf16.gmra.mrb[4].mxu0 %vm443_vm0, %v955_v14 }
  0xe7   : > { %v912_v15 = vpop.f32.mrb[0].mxu1 }
  0xe8   : > { %v635_v16 = vpop.f32.mrb[1].mxu1  ;;  %v644_v28 = vadd.f32 %v912_v15, %v1086_v24 }
  0xe9   : > { %v913_v17 = vpop.f32.mrb[2].mxu1  ;;  %v636_v32 = vadd.f32 %v1086_v24, %v635_v16 }
  0xea   : > { %v638_v18 = vpop.f32.mrb[3].mxu1  ;;  %v647_v39 = vadd.f32 %v913_v17, %v1086_v24 }
  0xeb   : > { %v639_v45 = vadd.f32 %v1086_v24, %v638_v18 }
  0xef   : > { %v916_v19 = vpop.f32.mrb[4].mxu1 }
  0xf0   : > { %v651_v20 = vpop.f32.mrb[5].mxu1  ;;  %v660_v55 = vadd.f32 %v916_v19, %v1086_v24 }
  0xf1   : > { %v917_v21 = vpop.f32.mrb[6].mxu1  ;;  %v652_v57 = vadd.f32 %v1086_v24, %v651_v20 }
  0xf2   : > { %v1078_v22 = vpop.f32.mrb[7].mxu1  ;;  %v902_v25 = vpop.f32.mrb[0].mxu0  ;;  %v663_v3 = vadd.f32 %v917_v21, %v1086_v24 }
  0xf3   : > { %v499_v26 = vadd.f32 %v902_v25, %v846_v23  ;;  %v490_v27 = vpop.f32.mrb[1].mxu0  ;;  %v655_v9 = vadd.f32 %v1086_v24, %v1078_v22 }
  0xf4   : > { %v491_v29 = vadd.f32 %v846_v23, %v490_v27  ;;  %v903_v30 = vpop.f32.mrb[2].mxu0 }
  0xf5   : > { %vm523_vm2 = vcmp.ge.f32.partialorder %v499_v26, 0.0  ;;  %v531_v31 = vmul.f32 0.2, %v499_v26  ;;  %v502_v33 = vadd.f32 %v903_v30, %v846_v23  ;;  %v493_v34 = vpop.f32.mrb[3].mxu0 }
  0xf6   : > { %vm521_vm3 = vcmp.ge.f32.partialorder %v491_v29, 0.0  ;;  %v529_v35 = vmul.f32 0.2, %v491_v29  ;;  %v494_v36 = vadd.f32 %v846_v23, %v493_v34 }
  0xf7   : > { %v539_v37 = vsel %vm523_vm2, %v499_v26, %v531_v31  ;;  %vm524_vm4 = vcmp.ge.f32.partialorder %v502_v33, 0.0  ;;  %v532_v38 = vmul.f32 0.2, %v502_v33 }
  0xf8   : > { %v668_v40 = vadd.f32 %v644_v28, %v539_v37  ;;  %v537_v41 = vsel %vm521_vm3, %v491_v29, %v529_v35  ;;  %vm522_vm5 = vcmp.ge.f32.partialorder %v494_v36, 0.0  ;;  %v530_v42 = vmul.f32 0.2, %v494_v36 }
  0xf9   : > { %v666_v43 = vadd.f32 %v636_v32, %v537_v41  ;;  %v540_v44 = vsel %vm524_vm4, %v502_v33, %v532_v38 }
  0xfa   : > { %v676_v46 = vmul.f32 0.70710677, %v668_v40  ;;  %v669_v47 = vadd.f32 %v647_v39, %v540_v44  ;;  %v538_v48 = vsel %vm522_vm5, %v494_v36, %v530_v42  ;;  %v906_v49 = vpop.f32.mrb[4].mxu0 }
  0xfb   : > { %v674_v50 = vmul.f32 0.70710677, %v666_v43  ;;  %v667_v51 = vadd.f32 %v639_v45, %v538_v48  ;;  %v515_v52 = vadd.f32 %v906_v49, %v846_v23  ;;  %v506_v53 = vpop.f32.mrb[5].mxu0 }
  0xfc   : > { %684 = vst [vmem:[%s1095_s10 + $0x10] sm:$0xff] %v676_v46  ;;  %v677_v54 = vmul.f32 0.70710677, %v669_v47  ;;  %v507_v56 = vadd.f32 %v846_v23, %v506_v53  ;;  %v907_v58 = vpop.f32.mrb[6].mxu0 }
  0xfd   : > { %682 = vst [vmem:[%s1095_s10] sm:$0xff] %v674_v50  ;;  %v675_v59 = vmul.f32 0.70710677, %v667_v51  ;;  %vm527_vm6 = vcmp.ge.f32.partialorder %v515_v52, 0.0  ;;  %v535_v60 = vmul.f32 0.2, %v515_v52  ;;  %v518_v61 = vadd.f32 %v907_v58, %v846_v23  ;;  %v509_v62 = vpop.f32.mrb[7].mxu0 }
  0xfe   : > { %685 = vst [vmem:[%s1095_s10 + $0x18] sm:$0xff] %v677_v54  ;;  %vm525_vm7 = vcmp.ge.f32.partialorder %v507_v56, 0.0  ;;  %v533_v63 = vmul.f32 0.2, %v507_v56  ;;  %v510_v0 = vadd.f32 %v846_v23, %v509_v62 }
  0xff   : > { %683 = vst [vmem:[%s1095_s10 + $0x8] sm:$0xff] %v675_v59  ;;  %v543_v1 = vsel %vm527_vm6, %v515_v52, %v535_v60  ;;  %vm528_vm8 = vcmp.ge.f32.partialorder %v518_v61, 0.0  ;;  %v536_v2 = vmul.f32 0.2, %v518_v61 }
 0x100   : > { %v672_v4 = vadd.f32 %v660_v55, %v543_v1  ;;  %v541_v5 = vsel %vm525_vm7, %v507_v56, %v533_v63  ;;  %vm526_vm9 = vcmp.ge.f32.partialorder %v510_v0, 0.0  ;;  %v534_v6 = vmul.f32 0.2, %v510_v0 }
 0x101   : > { %v670_v7 = vadd.f32 %v652_v57, %v541_v5  ;;  %v544_v8 = vsel %vm528_vm8, %v518_v61, %v536_v2 }
 0x102   : > { %v680_v10 = vmul.f32 0.70710677, %v672_v4  ;;  %v673_v11 = vadd.f32 %v663_v3, %v544_v8  ;;  %v542_v12 = vsel %vm526_vm9, %v510_v0, %v534_v6 }
 0x103   : > { %v678_v13 = vmul.f32 0.70710677, %v670_v7  ;;  %v671_v14 = vadd.f32 %v655_v9, %v542_v12 }
 0x104   : > { %688 = vst [vmem:[%s1095_s10 + $0x30] sm:$0xff] %v680_v10  ;;  %v681_v15 = vmul.f32 0.70710677, %v673_v11 }
 0x105   : > { %686 = vst [vmem:[%s1095_s10 + $0x20] sm:$0xff] %v678_v13  ;;  %v679_v16 = vmul.f32 0.70710677, %v671_v14 }
 0x106   : > { %689 = vst [vmem:[%s1095_s10 + $0x38] sm:$0xff] %v681_v15 }
 0x107   : > { %687 = vst [vmem:[%s1095_s10 + $0x28] sm:$0xff] %v679_v16 }
 0x108 PF: > { %s16_s23 = sadd.s32 1, %s979_s23   ;;  %s1127_s21 = smov %s975_s22 }
 0x109   : > { %p13_p5 = scmp.ge.s32.totalorder %s16_s23, 4   ;;  %s1128_s22 = smov %s1130_s24 }
 0x10b   :  { %15 = sbr.rel (!%p13_p5) target bundleno = 2 (0x2), region = 89 }

</bundles_post_ra>
